<compile_context>
chip_gen: v7x
topology: tpu7x:2x2x1
jax: 0.10.0
libtpu: 0.0.40
codegen_flags: <defaults>
</compile_context>

<pallas_src>
import jax
import jax.numpy as jnp
import numpy as np
from jax.experimental import pallas as pl
from jax.experimental.pallas import tpu as pltpu

# ---------------- configuration (small shapes) ----------------
B = 2                      # real batch
BP = 8                     # batch padded to a full sublane tile
CIN = 3
COUT = 16
H = W = 16                 # spatial (module uses 224)
HP, WP = H // 2, W // 2    # spatial after 2x2 max pool
F = COUT * HP * WP         # flattened features into fc1 (= 1024)
HID = 128                  # fc1 width
NCLS = 4                   # fc2 width
NCLS_PAD = 128             # fc2 output padded to lane-dense width

KPATCH = 9 * CIN           # 27 real values per conv patch
KPATCH_PAD = 32            # padded per-pw block: 27 taps + 1 bias-ones + 4 zeros
KROW = WP * KPATCH_PAD     # 256: one matmul row = patches of a whole pooled row
LANES = WP * COUT          # 128: conv-output lane dim = (pw, cout)

# the lane mapping below hard-codes these; fail loudly if shapes drift
assert BP == 8 and LANES == 128 and KROW == 256 and HID == 128 and NCLS_PAD == 128


# --------- fused kernel: conv3x3(+bias)+maxpool2x2+ReLU + fc1+ReLU + fc2 ---------
def fused_forward_kernel(p_ref, wc_ref, w1_ref, w2_ref, bias_ref, out_ref):
    # p_ref  : (4*HP*BP, KROW) bf16  rows=(parity, ph, b_pad), cols=(pw, 32-wide patch block
    #                                 with a ones column at slot 27 for the conv bias)
    # wc_ref : (KROW, LANES)   bf16  block-diagonal conv weights (bias row folded in)
    # w1_ref : (HP, LANES, HID) bf16 fc1 weights split by pooled row ph
    # w2_ref : (HID, NCLS_PAD) bf16  fc2 weights, cols zero-padded to 128
    # bias_ref:(8, NCLS_PAD)   f32   row 0 = fc1 bias, row 1 = fc2 bias (padded)
    # out_ref: (BP, NCLS_PAD)  f32   lane-dense logits (rows >= B, cols >= NCLS ignored)

    # conv (+ folded bias) for all 4 pool parities: one (256,256)x(256,128) MXU matmul.
    conv = jnp.dot(p_ref[...], wc_ref[...], preferred_element_type=jnp.float32)
    n = HP * BP
    # 2x2 max-pool == elementwise max over the 4 parity row-blocks (8-row-aligned slices);
    # per-lane bias commutes with max, ReLU is monotonic, so ReLU-after-pool is exact.
    pooled = jnp.maximum(jnp.maximum(conv[0:n], conv[n:2 * n]),
                         jnp.maximum(conv[2 * n:3 * n], conv[3 * n:4 * n]))   # (HP*BP, 128)
    act = jnp.maximum(pooled, 0.0).astype(jnp.bfloat16)                       # single bf16 pack

    b1 = bias_ref[0:1, :]                                                      # (1, 128) f32
    b2 = bias_ref[1:2, :]                                                      # (1, 128) f32

    # fc1: contraction over (ph, pw, cout); ph handled as HP accumulated K=128 matmuls.
    acc = jnp.dot(act[0:BP], w1_ref[0], preferred_element_type=jnp.float32)
    for ph in range(1, HP):
        acc = acc + jnp.dot(act[ph * BP:(ph + 1) * BP], w1_ref[ph],
                            preferred_element_type=jnp.float32)
    a1 = jnp.maximum(acc + b1, 0.0).astype(jnp.bfloat16)                       # (BP, HID)

    # fc2 (lane-dense padded output)
    out_ref[...] = jnp.dot(a1, w2_ref[...], preferred_element_type=jnp.float32) + b2


# ---------------- wrapper ----------------
@jax.jit
def alzheimer_cnn_forward(x_nchw, kernel_params):
    wc, w1, w2, bias = kernel_params

    # Glue (kept minimal): pad batch, single fused patch-extraction HLO, two reshapes,
    # two transposes, one concat -- all in bf16.
    xp = jnp.pad(x_nchw, ((0, BP - B), (0, 0), (0, 0), (0, 0))).astype(jnp.bfloat16)
    # (BP, 27, H, W); feature index = cin*9 + kh*3 + kw (cin-major), padding=1 like the conv.
    pt = jax.lax.conv_general_dilated_patches(
        xp, filter_shape=(3, 3), window_strides=(1, 1), padding=((1, 1), (1, 1)),
        dimension_numbers=("NCHW", "OIHW", "NCHW"))
    pt = jnp.transpose(pt, (0, 2, 3, 1))                                      # (BP, H, W, 27)
    ones = jnp.ones(pt.shape[:-1] + (1,), pt.dtype)                           # bias column
    zeros = jnp.zeros(pt.shape[:-1] + (KPATCH_PAD - KPATCH - 1,), pt.dtype)   # K padding
    pt = jnp.concatenate([pt, ones, zeros], axis=-1)                          # (BP, H, W, 32)
    pt = pt.reshape(BP, HP, 2, WP, 2, KPATCH_PAD)                             # (b,ph,a,pw,bb,f)
    pt = jnp.transpose(pt, (2, 4, 1, 0, 3, 5))                                # (a,bb,ph,b,pw,f)
    patches = pt.reshape(4 * HP * BP, KROW)                                   # (256, 256) bf16

    out_pad = pl.pallas_call(
        fused_forward_kernel,
        out_shape=jax.ShapeDtypeStruct((BP, NCLS_PAD), jnp.float32),
        in_specs=[pl.BlockSpec(memory_space=pltpu.MemorySpace.VMEM)] * 5,
        out_specs=pl.BlockSpec(memory_space=pltpu.MemorySpace.VMEM),
        cost_estimate=pl.CostEstimate(flops=19_000_000, transcendentals=0,
                                      bytes_accessed=500_000),
    )(patches, wc, w1, w2, bias)

    return out_pad[:B, :NCLS]


# ---------------- parameters (torch convention -> kernel layout) ----------------
def init_params(key):
    ks = jax.random.split(key, 6)
    conv_w_t = jax.random.normal(ks[0], (COUT, CIN, 3, 3), jnp.float32) / np.sqrt(CIN * 9)
    conv_b_t = jax.random.normal(ks[1], (COUT,), jnp.float32) * 0.1
    fc1_w_t = jax.random.normal(ks[2], (HID, F), jnp.float32) / np.sqrt(F)
    fc1_b_t = jax.random.normal(ks[3], (HID,), jnp.float32) * 0.1
    fc2_w_t = jax.random.normal(ks[4], (NCLS, HID), jnp.float32) / np.sqrt(HID)
    fc2_b_t = jax.random.normal(ks[5], (NCLS,), jnp.float32) * 0.1
    return (conv_w_t, conv_b_t, fc1_w_t, fc1_b_t, fc2_w_t, fc2_b_t)


def prepare_kernel_params(torch_params):
    conv_w_t, conv_b_t, fc1_w_t, fc1_b_t, fc2_w_t, fc2_b_t = torch_params

    # conv: OIHW -> rows ordered (cin, kh, kw) to match conv_general_dilated_patches,
    # padded 27 -> 32 with the bias in row 27 (matching the ones column); block-diagonal
    # over the WP pooled columns so the conv matmul output lanes are (pw, cout).
    w_tap = jnp.transpose(conv_w_t, (1, 2, 3, 0)).reshape(KPATCH, COUT)          # (27, 16)
    w_tap_pad = jnp.zeros((KPATCH_PAD, COUT), jnp.float32)
    w_tap_pad = w_tap_pad.at[:KPATCH].set(w_tap).at[KPATCH].set(conv_b_t)        # (32, 16)
    wc = jnp.kron(jnp.eye(WP, dtype=jnp.float32), w_tap_pad).astype(jnp.bfloat16)  # (256,128)

    # fc1: torch indexes features in NCHW flatten order f = cout*HP*WP + ph*WP + pw.
    # Kernel contracts per pooled row ph with lane index pw*COUT + cout.
    w1 = fc1_w_t.reshape(HID, COUT, HP, WP)
    w1 = jnp.transpose(w1, (2, 3, 1, 0)).reshape(HP, WP * COUT, HID).astype(jnp.bfloat16)

    # fc2: pad columns to a lane-dense 128.
    w2 = jnp.zeros((HID, NCLS_PAD), jnp.float32).at[:, :NCLS].set(fc2_w_t.T).astype(jnp.bfloat16)

    # fc1/fc2 biases stacked into one (8,128) f32 block: row 0 = b1, row 1 = b2 (padded).
    bias = jnp.zeros((8, NCLS_PAD), jnp.float32)
    bias = bias.at[0, :HID].set(fc1_b_t).at[1, :NCLS].set(fc2_b_t)

    return (wc, w1, w2, bias)


# ---------------- pure-JAX reference (PyTorch semantics, NCHW, f32) ----------------
def reference_forward(x_nchw, torch_params):
    conv_w_t, conv_b_t, fc1_w_t, fc1_b_t, fc2_w_t, fc2_b_t = torch_params
    y = jax.lax.conv_general_dilated(
        x_nchw, conv_w_t, window_strides=(1, 1), padding=((1, 1), (1, 1)),
        dimension_numbers=("NCHW", "OIHW", "NCHW"),
        precision=jax.lax.Precision.HIGHEST)
    y = jnp.maximum(y + conv_b_t[None, :, None, None], 0.0)
    y = jax.lax.reduce_window(y, -jnp.inf, jax.lax.max,
                              (1, 1, 2, 2), (1, 1, 2, 2), "VALID")
    h = y.reshape(y.shape[0], -1)   # NCHW flatten, like x.view(-1, 16*112*112)
    h = jnp.maximum(jnp.dot(h, fc1_w_t.T, precision=jax.lax.Precision.HIGHEST) + fc1_b_t, 0.0)
    return jnp.dot(h, fc2_w_t.T, precision=jax.lax.Precision.HIGHEST) + fc2_b_t


if __name__ == "__main__":
    key = jax.random.PRNGKey(0)
    kx, kp = jax.random.split(key)
    x = jax.random.normal(kx, (B, CIN, H, W), jnp.float32)   # NCHW like PyTorch
    torch_params = init_params(kp)
    kernel_params = prepare_kernel_params(torch_params)

    out = alzheimer_cnn_forward(x, kernel_params)
    out = jax.block_until_ready(out)
    assert out.shape == (B, NCLS)

    ref = reference_forward(x, torch_params)
    err = float(jnp.max(jnp.abs(out - ref)))
    assert err < 5e-2, f"max abs diff vs reference: {err}"   # tolerance absorbs bf16 weights/acts
    print("KERNEL_OK")
</pallas_src>

<mosaic_0001>
module attributes {stable_mosaic.version = 11 : i64} {
  func.func @fused_forward_kernel(%arg0: memref<256x256xbf16, #tpu.memory_space<vmem>>, %arg1: memref<256x128xbf16, #tpu.memory_space<vmem>>, %arg2: memref<8x128x128xbf16, #tpu.memory_space<vmem>>, %arg3: memref<128x128xbf16, #tpu.memory_space<vmem>>, %arg4: memref<8x128xf32, #tpu.memory_space<vmem>>, %arg5: memref<8x128xf32, #tpu.memory_space<vmem>>) attributes {dimension_semantics = [], scalar_prefetch = 0 : i64, scratch_operands = 0 : i64, tpu.core_type = #tpu.core_type<tc>} {
    %c0 = arith.constant 0 : index
    %c0_0 = arith.constant 0 : index
    %0 = vector.load %arg0[%c0, %c0_0] : memref<256x256xbf16, #tpu.memory_space<vmem>>, vector<256x256xbf16>
    %c0_1 = arith.constant 0 : index
    %c0_2 = arith.constant 0 : index
    %1 = vector.load %arg1[%c0_1, %c0_2] : memref<256x128xbf16, #tpu.memory_space<vmem>>, vector<256x128xbf16>
    %cst = arith.constant dense<0.000000e+00> : vector<256x128xf32>
    %2 = tpu.matmul %0, %1, %cst {dimension_numbers = #tpu.dot_dimension_numbers<[1], [0], [0], [1], [0, 0, 1, 1], [], []>} : vector<256x256xbf16>, vector<256x128xbf16>, vector<256x128xf32> -> vector<256x128xf32>
    %3 = vector.extract_strided_slice %2 {offsets = [0, 0], sizes = [64, 128], strides = [1, 1]} : vector<256x128xf32> to vector<64x128xf32>
    %4 = vector.extract_strided_slice %2 {offsets = [64, 0], sizes = [64, 128], strides = [1, 1]} : vector<256x128xf32> to vector<64x128xf32>
    %5 = arith.maximumf %3, %4 : vector<64x128xf32>
    %6 = vector.extract_strided_slice %2 {offsets = [128, 0], sizes = [64, 128], strides = [1, 1]} : vector<256x128xf32> to vector<64x128xf32>
    %7 = vector.extract_strided_slice %2 {offsets = [192, 0], sizes = [64, 128], strides = [1, 1]} : vector<256x128xf32> to vector<64x128xf32>
    %8 = arith.maximumf %6, %7 : vector<64x128xf32>
    %9 = arith.maximumf %5, %8 : vector<64x128xf32>
    %cst_3 = arith.constant 0.000000e+00 : f32
    %10 = vector.broadcast %cst_3 : f32 to vector<64x128xf32>
    %11 = arith.maximumf %9, %10 : vector<64x128xf32>
    %12 = arith.truncf %11 : vector<64x128xf32> to vector<64x128xbf16>
    %c0_4 = arith.constant 0 : index
    %c0_5 = arith.constant 0 : index
    %13 = vector.load %arg4[%c0_4, %c0_5] : memref<8x128xf32, #tpu.memory_space<vmem>>, vector<1x128xf32>
    %c1 = arith.constant 1 : index
    %c0_6 = arith.constant 0 : index
    %14 = vector.load %arg4[%c1, %c0_6] : memref<8x128xf32, #tpu.memory_space<vmem>>, vector<1x128xf32>
    %15 = vector.extract_strided_slice %12 {offsets = [0, 0], sizes = [8, 128], strides = [1, 1]} : vector<64x128xbf16> to vector<8x128xbf16>
    %c0_7 = arith.constant 0 : index
    %c0_8 = arith.constant 0 : index
    %c0_9 = arith.constant 0 : index
    %16 = vector.load %arg2[%c0_7, %c0_8, %c0_9] : memref<8x128x128xbf16, #tpu.memory_space<vmem>>, vector<1x128x128xbf16>
    %17 = vector.shape_cast %16 : vector<1x128x128xbf16> to vector<128x128xbf16>
    %cst_10 = arith.constant dense<0.000000e+00> : vector<8x128xf32>
    %18 = tpu.matmul %15, %17, %cst_10 {dimension_numbers = #tpu.dot_dimension_numbers<[1], [0], [0], [1], [0, 0, 1, 1], [], []>} : vector<8x128xbf16>, vector<128x128xbf16>, vector<8x128xf32> -> vector<8x128xf32>
    %19 = vector.extract_strided_slice %12 {offsets = [8, 0], sizes = [8, 128], strides = [1, 1]} : vector<64x128xbf16> to vector<8x128xbf16>
    %c1_11 = arith.constant 1 : index
    %c0_12 = arith.constant 0 : index
    %c0_13 = arith.constant 0 : index
    %20 = vector.load %arg2[%c1_11, %c0_12, %c0_13] : memref<8x128x128xbf16, #tpu.memory_space<vmem>>, vector<1x128x128xbf16>
    %21 = vector.shape_cast %20 : vector<1x128x128xbf16> to vector<128x128xbf16>
    %cst_14 = arith.constant dense<0.000000e+00> : vector<8x128xf32>
    %22 = tpu.matmul %19, %21, %cst_14 {dimension_numbers = #tpu.dot_dimension_numbers<[1], [0], [0], [1], [0, 0, 1, 1], [], []>} : vector<8x128xbf16>, vector<128x128xbf16>, vector<8x128xf32> -> vector<8x128xf32>
    %23 = arith.addf %18, %22 : vector<8x128xf32>
    %24 = vector.extract_strided_slice %12 {offsets = [16, 0], sizes = [8, 128], strides = [1, 1]} : vector<64x128xbf16> to vector<8x128xbf16>
    %c2 = arith.constant 2 : index
    %c0_15 = arith.constant 0 : index
    %c0_16 = arith.constant 0 : index
    %25 = vector.load %arg2[%c2, %c0_15, %c0_16] : memref<8x128x128xbf16, #tpu.memory_space<vmem>>, vector<1x128x128xbf16>
    %26 = vector.shape_cast %25 : vector<1x128x128xbf16> to vector<128x128xbf16>
    %cst_17 = arith.constant dense<0.000000e+00> : vector<8x128xf32>
    %27 = tpu.matmul %24, %26, %cst_17 {dimension_numbers = #tpu.dot_dimension_numbers<[1], [0], [0], [1], [0, 0, 1, 1], [], []>} : vector<8x128xbf16>, vector<128x128xbf16>, vector<8x128xf32> -> vector<8x128xf32>
    %28 = arith.addf %23, %27 : vector<8x128xf32>
    %29 = vector.extract_strided_slice %12 {offsets = [24, 0], sizes = [8, 128], strides = [1, 1]} : vector<64x128xbf16> to vector<8x128xbf16>
    %c3 = arith.constant 3 : index
    %c0_18 = arith.constant 0 : index
    %c0_19 = arith.constant 0 : index
    %30 = vector.load %arg2[%c3, %c0_18, %c0_19] : memref<8x128x128xbf16, #tpu.memory_space<vmem>>, vector<1x128x128xbf16>
    %31 = vector.shape_cast %30 : vector<1x128x128xbf16> to vector<128x128xbf16>
    %cst_20 = arith.constant dense<0.000000e+00> : vector<8x128xf32>
    %32 = tpu.matmul %29, %31, %cst_20 {dimension_numbers = #tpu.dot_dimension_numbers<[1], [0], [0], [1], [0, 0, 1, 1], [], []>} : vector<8x128xbf16>, vector<128x128xbf16>, vector<8x128xf32> -> vector<8x128xf32>
    %33 = arith.addf %28, %32 : vector<8x128xf32>
    %34 = vector.extract_strided_slice %12 {offsets = [32, 0], sizes = [8, 128], strides = [1, 1]} : vector<64x128xbf16> to vector<8x128xbf16>
    %c4 = arith.constant 4 : index
    %c0_21 = arith.constant 0 : index
    %c0_22 = arith.constant 0 : index
    %35 = vector.load %arg2[%c4, %c0_21, %c0_22] : memref<8x128x128xbf16, #tpu.memory_space<vmem>>, vector<1x128x128xbf16>
    %36 = vector.shape_cast %35 : vector<1x128x128xbf16> to vector<128x128xbf16>
    %cst_23 = arith.constant dense<0.000000e+00> : vector<8x128xf32>
    %37 = tpu.matmul %34, %36, %cst_23 {dimension_numbers = #tpu.dot_dimension_numbers<[1], [0], [0], [1], [0, 0, 1, 1], [], []>} : vector<8x128xbf16>, vector<128x128xbf16>, vector<8x128xf32> -> vector<8x128xf32>
    %38 = arith.addf %33, %37 : vector<8x128xf32>
    %39 = vector.extract_strided_slice %12 {offsets = [40, 0], sizes = [8, 128], strides = [1, 1]} : vector<64x128xbf16> to vector<8x128xbf16>
    %c5 = arith.constant 5 : index
    %c0_24 = arith.constant 0 : index
    %c0_25 = arith.constant 0 : index
    %40 = vector.load %arg2[%c5, %c0_24, %c0_25] : memref<8x128x128xbf16, #tpu.memory_space<vmem>>, vector<1x128x128xbf16>
    %41 = vector.shape_cast %40 : vector<1x128x128xbf16> to vector<128x128xbf16>
    %cst_26 = arith.constant dense<0.000000e+00> : vector<8x128xf32>
    %42 = tpu.matmul %39, %41, %cst_26 {dimension_numbers = #tpu.dot_dimension_numbers<[1], [0], [0], [1], [0, 0, 1, 1], [], []>} : vector<8x128xbf16>, vector<128x128xbf16>, vector<8x128xf32> -> vector<8x128xf32>
    %43 = arith.addf %38, %42 : vector<8x128xf32>
    %44 = vector.extract_strided_slice %12 {offsets = [48, 0], sizes = [8, 128], strides = [1, 1]} : vector<64x128xbf16> to vector<8x128xbf16>
    %c6 = arith.constant 6 : index
    %c0_27 = arith.constant 0 : index
    %c0_28 = arith.constant 0 : index
    %45 = vector.load %arg2[%c6, %c0_27, %c0_28] : memref<8x128x128xbf16, #tpu.memory_space<vmem>>, vector<1x128x128xbf16>
    %46 = vector.shape_cast %45 : vector<1x128x128xbf16> to vector<128x128xbf16>
    %cst_29 = arith.constant dense<0.000000e+00> : vector<8x128xf32>
    %47 = tpu.matmul %44, %46, %cst_29 {dimension_numbers = #tpu.dot_dimension_numbers<[1], [0], [0], [1], [0, 0, 1, 1], [], []>} : vector<8x128xbf16>, vector<128x128xbf16>, vector<8x128xf32> -> vector<8x128xf32>
    %48 = arith.addf %43, %47 : vector<8x128xf32>
    %49 = vector.extract_strided_slice %12 {offsets = [56, 0], sizes = [8, 128], strides = [1, 1]} : vector<64x128xbf16> to vector<8x128xbf16>
    %c7 = arith.constant 7 : index
    %c0_30 = arith.constant 0 : index
    %c0_31 = arith.constant 0 : index
    %50 = vector.load %arg2[%c7, %c0_30, %c0_31] : memref<8x128x128xbf16, #tpu.memory_space<vmem>>, vector<1x128x128xbf16>
    %51 = vector.shape_cast %50 : vector<1x128x128xbf16> to vector<128x128xbf16>
    %cst_32 = arith.constant dense<0.000000e+00> : vector<8x128xf32>
    %52 = tpu.matmul %49, %51, %cst_32 {dimension_numbers = #tpu.dot_dimension_numbers<[1], [0], [0], [1], [0, 0, 1, 1], [], []>} : vector<8x128xbf16>, vector<128x128xbf16>, vector<8x128xf32> -> vector<8x128xf32>
    %53 = arith.addf %48, %52 : vector<8x128xf32>
    %54 = vector.broadcast %13 : vector<1x128xf32> to vector<8x128xf32>
    %55 = arith.addf %53, %54 : vector<8x128xf32>
    %cst_33 = arith.constant 0.000000e+00 : f32
    %56 = vector.broadcast %cst_33 : f32 to vector<8x128xf32>
    %57 = arith.maximumf %55, %56 : vector<8x128xf32>
    %58 = arith.truncf %57 : vector<8x128xf32> to vector<8x128xbf16>
    %c0_34 = arith.constant 0 : index
    %c0_35 = arith.constant 0 : index
    %59 = vector.load %arg3[%c0_34, %c0_35] : memref<128x128xbf16, #tpu.memory_space<vmem>>, vector<128x128xbf16>
    %cst_36 = arith.constant dense<0.000000e+00> : vector<8x128xf32>
    %60 = tpu.matmul %58, %59, %cst_36 {dimension_numbers = #tpu.dot_dimension_numbers<[1], [0], [0], [1], [0, 0, 1, 1], [], []>} : vector<8x128xbf16>, vector<128x128xbf16>, vector<8x128xf32> -> vector<8x128xf32>
    %61 = vector.broadcast %14 : vector<1x128xf32> to vector<8x128xf32>
    %62 = arith.addf %60, %61 : vector<8x128xf32>
    %c0_37 = arith.constant 0 : index
    %c0_38 = arith.constant 0 : index
    %63 = vector.load %arg5[%c0_37, %c0_38] : memref<8x128xf32, #tpu.memory_space<vmem>>, vector<8x128xf32>
    tpu.vector_store %arg5[%c0_37, %c0_38], %62 {strides = array<i32>} : memref<8x128xf32, #tpu.memory_space<vmem>>, vector<8x128xf32>,
    return
  }
}

</mosaic_0001>

<bundles_post_ra>
// kernel: alzheimer_cnn_forward.1
= control target key start
LH: loop header
LB: loop body
LE: loop exit
PB: predicated region body
PF: predicated region fallthrough
CT: control target
= control target key end

     0   :  { %v2262_v48 = vmov 0.0   ;;  %vm2263_vm0 = vmmov 0   ;;  %s2835_s1 = inlined_call_operand.vmem [shape: bf16[256,128], index: 1, kind: input, shape index: {}]   ;;  %s2836_s0 = inlined_call_operand.vmem [shape: bf16[256,256], index: 0, kind: input, shape index: {}]   ;;  %s2837_s2 = inlined_call_operand.vmem [shape: bf16[8,128,128], index: 2, kind: input, shape index: {}]   ;;  %s2838_s3 = inlined_call_operand.vmem [shape: bf16[128,128], index: 3, kind: input, shape index: {}]   ;;  %s2839_s4 = inlined_call_operand.vmem [shape: f32[8,128], index: 4, kind: input, shape index: {}]   ;;  %s2840_s5 = inlined_call_operand.vmem [shape: f32[8,128], index: 5, kind: output, shape index: {}]  }
   0x1   :  { %v2126_v0 = vld [vmem:[%s2835_s1 + $0x40] sm:$0xff]   ;;  %v2128_v2 = vld [vmem:[%s2835_s1 + $0x48] sm:$0xff]   ;;  %v2130_v4 = vld [vmem:[%s2835_s1 + $0x50] sm:$0xff]   ;;  %1944 = vmatprep.subr.bf16.mxu1 %v2262_v48  ;;  %1960 = vmatprep.mubr.msk.bf16.mxu1 %vm2263_vm0, %v2262_v48 }
   0x2   :  { %v2127_v1 = vld [vmem:[%s2835_s1] sm:$0xff]   ;;  %1751 = vmatprep.subr.bf16.mxu0 %v2126_v0  ;;  %v2129_v3 = vld [vmem:[%s2835_s1 + $0x8] sm:$0xff]   ;;  %v2131_v5 = vld [vmem:[%s2835_s1 + $0x10] sm:$0xff]  }
   0x3   :  { %1752 = vmatpush3.bf16.msra.mxu0 %v2127_v1  ;;  %v2132_v6 = vld [vmem:[%s2835_s1 + $0x58] sm:$0xff]   ;;  %v2134_v8 = vld [vmem:[%s2835_s1 + $0x60] sm:$0xff]   ;;  %v2136_v10 = vld [vmem:[%s2835_s1 + $0x68] sm:$0xff]  }
   0x4   :  { %1753 = vmatprep.subr.bf16.mxu0 %v2128_v2  ;;  %v2133_v7 = vld [vmem:[%s2835_s1 + $0x18] sm:$0xff]   ;;  %v2135_v9 = vld [vmem:[%s2835_s1 + $0x20] sm:$0xff]   ;;  %v2137_v12 = vld [vmem:[%s2835_s1 + $0x28] sm:$0xff]  }
   0x5   :  { %v2144_v11 = vld [vmem:[%s2836_s0 + $0x4] ss:$8 sps:$4 sm:$0xff]   ;;  %v2138_v13 = vld [vmem:[%s2835_s1 + $0x70] sm:$0xff]   ;;  %v2140_v15 = vld [vmem:[%s2835_s1 + $0x78] sm:$0xff]  }
   0x6   :  { %373 = vmatprep.mubr.bf16.mxu0 %v2144_v11  ;;  %v2139_v14 = vld [vmem:[%s2835_s1 + $0x30] sm:$0xff]   ;;  %v2141_v16 = vld [vmem:[%s2835_s1 + $0x38] sm:$0xff]   ;;  %v2142_v17 = vld [vmem:[%s2836_s0] ss:$8 sps:$4 sm:$0xff]  }
   0x7   :  { %1754 = vmatpush3.bf16.msra.mxu0 %v2129_v3  ;;  %v2145_v18 = vld [vmem:[%s2836_s0 + $0x14] ss:$8 sps:$4 sm:$0xff]   ;;  %v2147_v19 = vld [vmem:[%s2836_s0 + $0x10] ss:$8 sps:$4 sm:$0xff]   ;;  %v2148_v20 = vld [vmem:[%s2836_s0 + $0x24] ss:$8 sps:$4 sm:$0xff]  }
   0x8   :  { %1755 = vmatprep.subr.bf16.mxu0 %v2130_v4  ;;  %v2150_v21 = vld [vmem:[%s2836_s0 + $0x20] ss:$8 sps:$4 sm:$0xff]   ;;  %v2151_v22 = vld [vmem:[%s2836_s0 + $0x34] ss:$8 sps:$4 sm:$0xff]   ;;  %v2153_v23 = vld [vmem:[%s2836_s0 + $0x30] ss:$8 sps:$4 sm:$0xff]  }
   0x9   :  { %v2154_v24 = vld [vmem:[%s2836_s0 + $0x44] ss:$8 sps:$4 sm:$0xff]   ;;  %v2156_v25 = vld [vmem:[%s2836_s0 + $0x40] ss:$8 sps:$4 sm:$0xff]   ;;  %v2157_v26 = vld [vmem:[%s2836_s0 + $0x54] ss:$8 sps:$4 sm:$0xff]  }
   0xa   :  { %v2159_v27 = vld [vmem:[%s2836_s0 + $0x50] ss:$8 sps:$4 sm:$0xff]   ;;  %v2160_v28 = vld [vmem:[%s2836_s0 + $0x64] ss:$8 sps:$4 sm:$0xff]   ;;  %v2162_v29 = vld [vmem:[%s2836_s0 + $0x60] ss:$8 sps:$4 sm:$0xff]  }
   0xb   :  { %1756 = vmatpush3.bf16.msra.mxu0 %v2131_v5  ;;  %v2163_v30 = vld [vmem:[%s2836_s0 + $0x74] ss:$8 sps:$4 sm:$0xff]   ;;  %v2165_v31 = vld [vmem:[%s2836_s0 + $0x70] ss:$8 sps:$4 sm:$0xff]   ;;  %v2166_v32 = vld [vmem:[%s2836_s0 + $0x84] ss:$8 sps:$4 sm:$0xff]  }
   0xc   :  { %1757 = vmatprep.subr.bf16.mxu0 %v2132_v6  ;;  %v2168_v33 = vld [vmem:[%s2836_s0 + $0x80] ss:$8 sps:$4 sm:$0xff]   ;;  %v2169_v34 = vld [vmem:[%s2836_s0 + $0x94] ss:$8 sps:$4 sm:$0xff]   ;;  %v2171_v35 = vld [vmem:[%s2836_s0 + $0x90] ss:$8 sps:$4 sm:$0xff]  }
   0xd   :  { %v2172_v36 = vld [vmem:[%s2836_s0 + $0xa4] ss:$8 sps:$4 sm:$0xff]   ;;  %v2174_v37 = vld [vmem:[%s2836_s0 + $0xa0] ss:$8 sps:$4 sm:$0xff]   ;;  %v2175_v38 = vld [vmem:[%s2836_s0 + $0xb4] ss:$8 sps:$4 sm:$0xff]  }
   0xe   :  { %v2177_v39 = vld [vmem:[%s2836_s0 + $0xb0] ss:$8 sps:$4 sm:$0xff]   ;;  %v2178_v40 = vld [vmem:[%s2836_s0 + $0xc4] ss:$8 sps:$4 sm:$0xff]   ;;  %v2180_v41 = vld [vmem:[%s2836_s0 + $0xc0] ss:$8 sps:$4 sm:$0xff]  }
   0xf   :  { %1758 = vmatpush3.bf16.msra.mxu0 %v2133_v7  ;;  %v2181_v42 = vld [vmem:[%s2836_s0 + $0xd4] ss:$8 sps:$4 sm:$0xff]   ;;  %v2183_v43 = vld [vmem:[%s2836_s0 + $0xd0] ss:$8 sps:$4 sm:$0xff]   ;;  %v2184_v44 = vld [vmem:[%s2836_s0 + $0xe4] ss:$8 sps:$4 sm:$0xff]  }
  0x10   :  { %1759 = vmatprep.subr.bf16.mxu0 %v2134_v8  ;;  %v2186_v45 = vld [vmem:[%s2836_s0 + $0xe0] ss:$8 sps:$4 sm:$0xff]   ;;  %v2187_v46 = vld [vmem:[%s2836_s0 + $0xf4] ss:$8 sps:$4 sm:$0xff]   ;;  %v2189_v47 = vld [vmem:[%s2836_s0 + $0xf0] ss:$8 sps:$4 sm:$0xff]  }
  0x11   :  { %v2190_v49 = vld [vmem:[%s2837_s2 + $0x40] sm:$0xff]   ;;  %v2191_v50 = vld [vmem:[%s2837_s2 + $0x48] sm:$0xff]   ;;  %v2192_v51 = vld [vmem:[%s2837_s2 + $0x50] sm:$0xff]  }
  0x12   :  { %1945 = vmatpush3.bf16.msra.mxu1 %v2190_v49  ;;  %v2193_v52 = vld [vmem:[%s2837_s2 + $0x58] sm:$0xff]   ;;  %v2194_v53 = vld [vmem:[%s2837_s2 + $0x100] sm:$0xff]   ;;  %v2196_v55 = vld [vmem:[%s2837_s2 + $0x108] sm:$0xff]  }
  0x13   :  { %1760 = vmatpush3.bf16.msra.mxu0 %v2135_v9  ;;  %1946 = vmatprep.subr.bf16.mxu1 %v2262_v48  ;;  %v2195_v54 = vld [vmem:[%s2837_s2 + $0x60] sm:$0xff]   ;;  %v2197_v56 = vld [vmem:[%s2837_s2 + $0x68] sm:$0xff]   ;;  %v2198_v57 = vld [vmem:[%s2837_s2 + $0x110] sm:$0xff]  }
  0x14   :  { %1761 = vmatprep.subr.bf16.mxu0 %v2136_v10  ;;  %v2199_v58 = vld [vmem:[%s2837_s2 + $0x70] sm:$0xff]   ;;  %v2200_v59 = vld [vmem:[%s2837_s2 + $0x118] sm:$0xff]   ;;  %v2202_v61 = vld [vmem:[%s2837_s2 + $0x120] sm:$0xff]  }
  0x15   :  { %v2201_v60 = vld [vmem:[%s2837_s2 + $0x78] sm:$0xff]   ;;  %v2204_v62 = vld [vmem:[%s2837_s2 + $0x128] sm:$0xff]   ;;  %v2206_v63 = vld [vmem:[%s2837_s2 + $0x130] sm:$0xff]  }
  0x16   :  { %1947 = vmatpush3.bf16.msra.mxu1 %v2191_v50  ;;  %v2208_v0 = vld [vmem:[%s2837_s2 + $0x138] sm:$0xff]  }
  0x17   :  { %1762 = vmatpush3.bf16.msra.mxu0 %v2137_v12  ;;  %1948 = vmatprep.subr.bf16.mxu1 %v2262_v48 }
  0x18   :  { %1763 = vmatprep.subr.bf16.mxu0 %v2138_v13 }
  0x1a   :  { %1949 = vmatpush3.bf16.msra.mxu1 %v2192_v51 }
  0x1b   :  { %1764 = vmatpush3.bf16.msra.mxu0 %v2139_v14  ;;  %1950 = vmatprep.subr.bf16.mxu1 %v2262_v48 }
  0x1c   :  { %1765 = vmatprep.subr.bf16.mxu0 %v2140_v15 }
  0x1e   :  { %1951 = vmatpush3.bf16.msra.mxu1 %v2193_v52 }
  0x1f   :  { %1766 = vmatpush3.bf16.msra.mxu0 %v2141_v16  ;;  %1952 = vmatprep.subr.bf16.mxu1 %v2262_v48 }
  0x20   :  { %2024 = vmatprep.subr.bf16.mxu0 %v2262_v48 }
  0x22   :  { %374 = vmatmul.mubr.bf16.vlgmr.msra.gmra.mrb[0].mxu0 %v2142_v17  ;;  %1953 = vmatpush3.bf16.msra.mxu1 %v2195_v54 }
  0x23   :  { %381 = vmatprep.mubr.bf16.mxu0 %v2145_v18  ;;  %2025 = vmatpush3.bf16.msra.mxu0 %v2194_v53 }
  0x24   :  { %2026 = vmatprep.subr.bf16.mxu0 %v2262_v48  ;;  %1954 = vmatprep.subr.bf16.mxu1 %v2262_v48 }
  0x26   :  { %1955 = vmatpush3.bf16.msra.mxu1 %v2197_v56 }
  0x27   :  { %2027 = vmatpush3.bf16.msra.mxu0 %v2196_v55  ;;  %1956 = vmatprep.subr.bf16.mxu1 %v2262_v48 }
  0x28   :  { %2028 = vmatprep.subr.bf16.mxu0 %v2262_v48 }
  0x2a   :  { %382 = vmatmul.mubr.bf16.gmra.mrb[4].mxu0 %v2147_v19  ;;  %1957 = vmatpush3.bf16.msra.mxu1 %v2199_v58 }
  0x2b   :  { %389 = vmatprep.mubr.bf16.mxu0 %v2148_v20  ;;  %2029 = vmatpush3.bf16.msra.mxu0 %v2198_v57 }
  0x2c   :  { %2030 = vmatprep.subr.bf16.mxu0 %v2262_v48  ;;  %1958 = vmatprep.subr.bf16.mxu1 %v2262_v48 }
  0x2e   :  { %1959 = vmatpush3.bf16.msra.mxu1 %v2201_v60 }
  0x2f   :  { %2031 = vmatpush3.bf16.msra.mxu0 %v2200_v59  ;;  %1964 = vmatprep.subr.bf16.mxu1 %v2262_v48 }
  0x30   :  { %2032 = vmatprep.subr.bf16.mxu0 %v2262_v48 }
  0x32   :  { %390 = vmatmul.mubr.bf16.gmra.mrb[8].mxu0 %v2150_v21 }
  0x33   :  { %397 = vmatprep.mubr.bf16.mxu0 %v2151_v22  ;;  %2033 = vmatpush3.bf16.msra.mxu0 %v2202_v61 }
  0x34   :  { %2034 = vmatprep.subr.bf16.mxu0 %v2262_v48 }
  0x37   :  { %2035 = vmatpush3.bf16.msra.mxu0 %v2204_v62 }
  0x38   :  { %2036 = vmatprep.subr.bf16.mxu0 %v2262_v48 }
  0x3a   :  { %398 = vmatmul.mubr.bf16.gmra.mrb[12].mxu0 %v2153_v23 }
  0x3b   :  { %405 = vmatprep.mubr.bf16.mxu0 %v2154_v24  ;;  %2037 = vmatpush3.bf16.msra.mxu0 %v2206_v63 }
  0x3c   :  { %2038 = vmatprep.subr.bf16.mxu0 %v2262_v48 }
  0x3f   :  { %2039 = vmatpush3.bf16.msra.mxu0 %v2208_v0 }
  0x40   :  { %2064 = vmatprep.subr.bf16.mxu0 %v2262_v48 }
  0x42   :  { %406 = vmatmul.mubr.bf16.gmra.mrb[16].mxu0 %v2156_v25 }
  0x43   :  { %413 = vmatprep.mubr.bf16.mxu0 %v2157_v26 }
  0x4a   :  { %414 = vmatmul.mubr.bf16.gmra.mrb[20].mxu0 %v2159_v27 }
  0x4b   :  { %421 = vmatprep.mubr.bf16.mxu0 %v2160_v28 }
  0x52   :  { %422 = vmatmul.mubr.bf16.gmra.mrb[24].mxu0 %v2162_v29 }
  0x53   :  { %429 = vmatprep.mubr.bf16.mxu0 %v2163_v30 }
  0x5a   :  { %430 = vmatmul.mubr.bf16.gmra.mrb[28].mxu0 %v2165_v31 }
  0x5b   :  { %437 = vmatprep.mubr.bf16.mxu0 %v2166_v32 }
  0x62   :  { %438 = vmatmul.mubr.bf16.gmra.mrb[32].mxu0 %v2168_v33 }
  0x63   :  { %445 = vmatprep.mubr.bf16.mxu0 %v2169_v34 }
  0x6a   :  { %446 = vmatmul.mubr.bf16.gmra.mrb[36].mxu0 %v2171_v35 }
  0x6b   :  { %453 = vmatprep.mubr.bf16.mxu0 %v2172_v36 }
  0x72   :  { %454 = vmatmul.mubr.bf16.gmra.mrb[40].mxu0 %v2174_v37 }
  0x73   :  { %461 = vmatprep.mubr.bf16.mxu0 %v2175_v38 }
  0x7a   :  { %462 = vmatmul.mubr.bf16.gmra.mrb[44].mxu0 %v2177_v39 }
  0x7b   :  { %469 = vmatprep.mubr.bf16.mxu0 %v2178_v40 }
  0x82   :  { %470 = vmatmul.mubr.bf16.gmra.mrb[48].mxu0 %v2180_v41 }
  0x83   :  { %477 = vmatprep.mubr.bf16.mxu0 %v2181_v42 }
  0x8a   :  { %478 = vmatmul.mubr.bf16.gmra.mrb[52].mxu0 %v2183_v43 }
  0x8b   :  { %485 = vmatprep.mubr.bf16.mxu0 %v2184_v44 }
  0x92   :  { %486 = vmatmul.mubr.bf16.gmra.mrb[56].mxu0 %v2186_v45 }
  0x93   :  { %493 = vmatprep.mubr.bf16.mxu0 %v2187_v46 }
  0x9a   :  { %494 = vmatmul.mubr.bf16.gmra.mrb[60].mxu0 %v2189_v47 }
  0x9b   :  { %2040 = vmatprep.mubr.msk.bf16.mxu0 %vm2263_vm0, %v2262_v48 }
  0xf5   :  { %v1767_v1 = vpop.f32.mrb[0].mxu0 }
  0xf6   :  { %v1768_v2 = vpop.f32.mrb[1].mxu0 }
  0xf7   :  { %v2508_v3 = vadd.f32 %v1768_v2, %v1767_v1  ;;  %v1770_v4 = vpop.f32.mrb[2].mxu0 }
  0xf8   :  { %v1771_v5 = vpop.f32.mrb[3].mxu0 }
  0xf9   :  { %v2510_v6 = vadd.f32 %v1771_v5, %v1770_v4 }
  0xfd   :  { %v1773_v7 = vpop.f32.mrb[4].mxu0 }
  0xfe   :  { %v1774_v8 = vpop.f32.mrb[5].mxu0 }
  0xff   :  { %v2512_v9 = vadd.f32 %v1774_v8, %v1773_v7  ;;  %v1776_v10 = vpop.f32.mrb[6].mxu0 }
 0x100   :  { %v1777_v11 = vpop.f32.mrb[7].mxu0 }
 0x101   :  { %v2514_v12 = vadd.f32 %v1777_v11, %v1776_v10 }
 0x105   :  { %v1779_v13 = vpop.f32.mrb[8].mxu0 }
 0x106   :  { %v1780_v14 = vpop.f32.mrb[9].mxu0 }
 0x107   :  { %v2516_v15 = vadd.f32 %v1780_v14, %v1779_v13  ;;  %v1782_v16 = vpop.f32.mrb[10].mxu0 }
 0x108   :  { %v1783_v17 = vpop.f32.mrb[11].mxu0 }
 0x109   :  { %v2518_v18 = vadd.f32 %v1783_v17, %v1782_v16 }
 0x10d   :  { %v1785_v19 = vpop.f32.mrb[12].mxu0 }
 0x10e   :  { %v1786_v20 = vpop.f32.mrb[13].mxu0 }
 0x10f   :  { %v2520_v21 = vadd.f32 %v1786_v20, %v1785_v19  ;;  %v1788_v22 = vpop.f32.mrb[14].mxu0 }
 0x110   :  { %v1789_v23 = vpop.f32.mrb[15].mxu0 }
 0x111   :  { %v2522_v24 = vadd.f32 %v1789_v23, %v1788_v22 }
 0x115   :  { %v1791_v25 = vpop.f32.mrb[16].mxu0 }
 0x116   :  { %v1792_v26 = vpop.f32.mrb[17].mxu0 }
 0x117   :  { %v1793_v27 = vadd.f32 %v1792_v26, %v1791_v25  ;;  %v1794_v28 = vpop.f32.mrb[18].mxu0 }
 0x118   :  { %v1795_v29 = vpop.f32.mrb[19].mxu0 }
 0x119   :  { %v502_v30 = vmax.f32 %v2508_v3, %v1793_v27  ;;  %v1796_v31 = vadd.f32 %v1795_v29, %v1794_v28 }
 0x11b   :  { %v503_v32 = vmax.f32 %v2510_v6, %v1796_v31 }
 0x11d   :  { %v1797_v33 = vpop.f32.mrb[20].mxu0 }
 0x11e   :  { %v1798_v34 = vpop.f32.mrb[21].mxu0 }
 0x11f   :  { %v2526_v35 = vadd.f32 %v1798_v34, %v1797_v33  ;;  %v1800_v36 = vpop.f32.mrb[22].mxu0 }
 0x120   :  { %v1801_v37 = vpop.f32.mrb[23].mxu0 }
 0x121   :  { %v504_v38 = vmax.f32 %v2512_v9, %v2526_v35  ;;  %v2530_v39 = vadd.f32 %v1801_v37, %v1800_v36 }
 0x123   :  { %v505_v40 = vmax.f32 %v2514_v12, %v2530_v39 }
 0x125   :  { %v1803_v41 = vpop.f32.mrb[24].mxu0 }
 0x126   :  { %v1804_v42 = vpop.f32.mrb[25].mxu0 }
 0x127   :  { %v2534_v43 = vadd.f32 %v1804_v42, %v1803_v41  ;;  %v1806_v44 = vpop.f32.mrb[26].mxu0 }
 0x128   :  { %v1807_v45 = vpop.f32.mrb[27].mxu0 }
 0x129   :  { %v506_v46 = vmax.f32 %v2516_v15, %v2534_v43  ;;  %v2538_v47 = vadd.f32 %v1807_v45, %v1806_v44  ;;  %v2210_v43 = vld [vmem:[%s2837_s2 + $0x180] sm:$0xff]  }
 0x12b   :  { %v507_v49 = vmax.f32 %v2518_v18, %v2538_v47 }
 0x12d   :  { %v1809_v50 = vpop.f32.mrb[28].mxu0 }
 0x12e   :  { %v1810_v51 = vpop.f32.mrb[29].mxu0 }
 0x12f   :  { %v2542_v52 = vadd.f32 %v1810_v51, %v1809_v50  ;;  %v1812_v53 = vpop.f32.mrb[30].mxu0 }
 0x130   :  { %v1813_v54 = vpop.f32.mrb[31].mxu0 }
 0x131   :  { %v508_v55 = vmax.f32 %v2520_v21, %v2542_v52  ;;  %v2546_v56 = vadd.f32 %v1813_v54, %v1812_v53  ;;  %v2213_v21 = vld [vmem:[%s2837_s2 + $0x28] sm:$0xff]  }
 0x133   :  { %v509_v57 = vmax.f32 %v2522_v24, %v2546_v56  ;;  %v2215_v24 = vld [vmem:[%s2837_s2 + $0x30] sm:$0xff]   ;;  %v2216_v56 = vld [vmem:[%s2837_s2 + $0x198] sm:$0xff]  }
 0x135   :  { %v1815_v58 = vpop.f32.mrb[32].mxu0 }
 0x136   :  { %v1816_v59 = vpop.f32.mrb[33].mxu0 }
 0x137   :  { %v1817_v60 = vadd.f32 %v1816_v59, %v1815_v58  ;;  %v1818_v61 = vpop.f32.mrb[34].mxu0  ;;  %v2203_v59 = vld [vmem:[%s2837_s2] sm:$0xff]  }
 0x138   :  { %v1819_v62 = vpop.f32.mrb[35].mxu0 }
 0x139   :  { %v1820_v63 = vadd.f32 %v1819_v62, %v1818_v61 }
 0x13d   :  { %v1821_v0 = vpop.f32.mrb[36].mxu0 }
 0x13e   :  { %v1822_v1 = vpop.f32.mrb[37].mxu0 }
 0x13f   :  { %v1823_v2 = vadd.f32 %v1822_v1, %v1821_v0  ;;  %v1824_v3 = vpop.f32.mrb[38].mxu0  ;;  %v2205_v0 = vld [vmem:[%s2837_s2 + $0x8] sm:$0xff]  }
 0x140   :  { %v1825_v4 = vpop.f32.mrb[39].mxu0 }
 0x141   :  { %v1826_v5 = vadd.f32 %v1825_v4, %v1824_v3  ;;  %v2207_v3 = vld [vmem:[%s2837_s2 + $0x10] sm:$0xff]  }
 0x145   :  { %v1827_v6 = vpop.f32.mrb[40].mxu0 }
 0x146   :  { %v1828_v7 = vpop.f32.mrb[41].mxu0 }
 0x147   :  { %v1829_v8 = vadd.f32 %v1828_v7, %v1827_v6  ;;  %v1830_v10 = vpop.f32.mrb[42].mxu0 }
 0x148   :  { %v1831_v11 = vpop.f32.mrb[43].mxu0 }
 0x149   :  { %v1832_v13 = vadd.f32 %v1831_v11, %v1830_v10  ;;  %v2209_v10 = vld [vmem:[%s2837_s2 + $0x18] sm:$0xff]  }
 0x14d   :  { %v1833_v14 = vpop.f32.mrb[44].mxu0 }
 0x14e   :  { %v1834_v16 = vpop.f32.mrb[45].mxu0 }
 0x14f   :  { %v2550_v17 = vadd.f32 %v1834_v16, %v1833_v14  ;;  %v1836_v19 = vpop.f32.mrb[46].mxu0 }
 0x150   :  { %v1837_v20 = vpop.f32.mrb[47].mxu0 }
 0x151   :  { %v2552_v22 = vadd.f32 %v1837_v20, %v1836_v19 }
 0x155   :  { %v1839_v23 = vpop.f32.mrb[48].mxu0 }
 0x156   :  { %v1840_v25 = vpop.f32.mrb[49].mxu0 }
 0x157   :  { %v1841_v26 = vadd.f32 %v1840_v25, %v1839_v23  ;;  %v1842_v27 = vpop.f32.mrb[50].mxu0 }
 0x158   :  { %v1843_v28 = vpop.f32.mrb[51].mxu0 }
 0x159   :  { %v510_v29 = vmax.f32 %v1817_v60, %v1841_v26  ;;  %v1844_v31 = vadd.f32 %v1843_v28, %v1842_v27  ;;  %v2218_v26 = vld [vmem:[%s2837_s2 + $0x1a0] sm:$0xff]   ;;  %v2220_v28 = vld [vmem:[%s2837_s2 + $0x1a8] sm:$0xff]  }
 0x15a   :  { %v2219_v27 = vld [vmem:[%s2837_s2 + $0x80] sm:$0xff]  }
 0x15b   :  { %v518_v33 = vmax.f32 %v502_v30, %v510_v29  ;;  %v511_v34 = vmax.f32 %v1820_v63, %v1844_v31  ;;  %v2221_v29 = vld [vmem:[%s2837_s2 + $0x88] sm:$0xff]   ;;  %v2222_v31 = vld [vmem:[%s2837_s2 + $0x1b0] sm:$0xff]  }
 0x15d   :  { %v519_v36 = vmax.f32 %v503_v32, %v511_v34  ;;  %v1845_v37 = vpop.f32.mrb[52].mxu0  ;;  %v526_v42 = vmax.f32 %v518_v33, 0.0  ;;  %v2223_v33 = vld [vmem:[%s2837_s2 + $0x90] sm:$0xff]   ;;  %v2224_v34 = vld [vmem:[%s2837_s2 + $0x1b8] sm:$0xff]  }
 0x15e   :  { %v1846_v41 = vpop.f32.mrb[53].mxu0 }
 0x15f   :  { %v527_v44 = vmax.f32 %v519_v36, 0.0  ;;  %v1847_v45 = vadd.f32 %v1846_v41, %v1845_v37  ;;  %v1848_v50 = vpop.f32.mrb[54].mxu0  ;;  %v2225_v36 = vld [vmem:[%s2837_s2 + $0x98] sm:$0xff]   ;;  %v2226_v37 = vld [vmem:[%s2837_s2 + $0xa0] sm:$0xff]   ;;  %v2227_v41 = vld [vmem:[%s2837_s2 + $0xa8] sm:$0xff]  }
 0x160   :  { %v1849_v51 = vpop.f32.mrb[55].mxu0 }
 0x161   :  { %v512_v53 = vmax.f32 %v1823_v2, %v1847_v45  ;;  %v1850_v54 = vadd.f32 %v1849_v51, %v1848_v50  ;;  %v2554_v58 = vpack.c.bf16 %v527_v44, %v526_v42  ;;  %v2228_v42 = vld [vmem:[%s2837_s2 + $0xb0] sm:$0xff]   ;;  %v2229_v44 = vld [vmem:[%s2837_s2 + $0xb8] sm:$0xff]   ;;  %v2230_v45 = vld [vmem:[%s2837_s2 + $0xc0] sm:$0xff]  }
 0x162   :  { %v2231_v50 = vld [vmem:[%s2837_s2 + $0xc8] sm:$0xff]   ;;  %v2232_v51 = vld [vmem:[%s2837_s2 + $0xd0] sm:$0xff]  }
 0x163   :  { %v520_v30 = vmax.f32 %v504_v38, %v512_v53  ;;  %v513_v32 = vmax.f32 %v1826_v5, %v1850_v54  ;;  %v574_v60 = vrot.slane %v2554_v58, 4  ;;  %v2233_v53 = vld [vmem:[%s2837_s2 + $0xd8] sm:$0xff]   ;;  %v2234_v54 = vld [vmem:[%s2837_s2 + $0xe0] sm:$0xff]  }
 0x165   :  { %v521_v61 = vmax.f32 %v505_v40, %v513_v32  ;;  %v1851_v62 = vpop.f32.mrb[56].mxu0  ;;  %1961 = vmatmul.mubr.bf16.vlgmr.msra.gmra.mrb[0].mxu1 %v574_v60  ;;  %v528_v9 = vmax.f32 %v520_v30, 0.0  ;;  %v2237_v30 = vld [vmem:[%s2837_s2 + $0xf8] sm:$0xff]   ;;  %v2238_v32 = vld [vmem:[%s2837_s2 + $0x140] sm:$0xff]  }
 0x166   :  { %1965 = vmatpush3.bf16.msra.mxu1 %v2203_v59  ;;  %v1852_v63 = vpop.f32.mrb[57].mxu0  ;;  %1980 = vmatprep.mubr.msk.bf16.mxu1 %vm2263_vm0, %v2262_v48  ;;  %v2236_v59 = vld [vmem:[%s2837_s2 + $0xf0] sm:$0xff]  }
 0x167   :  { %v529_v35 = vmax.f32 %v521_v61, 0.0  ;;  %v1853_v38 = vadd.f32 %v1852_v63, %v1851_v62  ;;  %v1854_v1 = vpop.f32.mrb[58].mxu0  ;;  %1966 = vmatprep.subr.bf16.mxu1 %v2262_v48  ;;  %v2239_v61 = vld [vmem:[%s2837_s2 + $0x148] sm:$0xff]   ;;  %v2240_v62 = vld [vmem:[%s2837_s2 + $0x150] sm:$0xff]   ;;  %v2241_v63 = vld [vmem:[%s2837_s2 + $0x158] sm:$0xff]  }
 0x168   :  { %v1855_v2 = vpop.f32.mrb[59].mxu0 }
 0x169   :  { %v2572_v12 = vpack.c.bf16 %v529_v35, %v528_v9  ;;  %v514_v39 = vmax.f32 %v1829_v8, %v1853_v38  ;;  %v1856_v40 = vadd.f32 %v1855_v2, %v1854_v1  ;;  %v2243_v9 = vld [vmem:[%s2837_s2 + $0x168] sm:$0xff]   ;;  %v2244_v35 = vld [vmem:[%s2837_s2 + $0x170] sm:$0xff]   ;;  %v2245_v38 = vld [vmem:[%s2837_s2 + $0x178] sm:$0xff]  }
 0x16a   :  { %1967 = vmatpush3.bf16.msra.mxu1 %v2205_v0  ;;  %v2242_v0 = vld [vmem:[%s2837_s2 + $0x160] sm:$0xff]  }
 0x16b   :  { %v522_v4 = vmax.f32 %v506_v46, %v514_v39  ;;  %v515_v5 = vmax.f32 %v1832_v13, %v1856_v40  ;;  %1968 = vmatprep.subr.bf16.mxu1 %v2262_v48  ;;  %v876_v60 = vrot.slane %v2572_v12, 4  ;;  %v2246_v1 = vld [vmem:[%s2837_s2 + $0x1c0] sm:$0xff]   ;;  %v2248_v39 = vld [vmem:[%s2837_s2 + $0x1d0] sm:$0xff]   ;;  %v2249_v40 = vld [vmem:[%s2837_s2 + $0x1d8] sm:$0xff]  }
 0x16d   :  { %v523_v6 = vmax.f32 %v507_v49, %v515_v5  ;;  %v1857_v7 = vpop.f32.mrb[60].mxu0  ;;  %v530_v11 = vmax.f32 %v522_v4, 0.0  ;;  %v2211_v49 = vld [vmem:[%s2837_s2 + $0x20] sm:$0xff]   ;;  %v2251_v4 = vld [vmem:[%s2837_s2 + $0x1e8] sm:$0xff]   ;;  %v2252_v5 = vld [vmem:[%s2837_s2 + $0x1f0] sm:$0xff]  }
 0x16e   :  { %1969 = vmatpush3.bf16.msra.mxu1 %v2207_v3  ;;  %v1858_v8 = vpop.f32.mrb[61].mxu0  ;;  %v2250_v3 = vld [vmem:[%s2837_s2 + $0x1e0] sm:$0xff]  }
 0x16f   :  { %v531_v14 = vmax.f32 %v523_v6, 0.0  ;;  %v1859_v16 = vadd.f32 %v1858_v8, %v1857_v7  ;;  %v1860_v19 = vpop.f32.mrb[62].mxu0  ;;  %1970 = vmatprep.subr.bf16.mxu1 %v2262_v48  ;;  %v2253_v6 = vld [vmem:[%s2837_s2 + $0x1f8] sm:$0xff]  }
 0x170   :  { %v1861_v15 = vpop.f32.mrb[63].mxu0 }
 0x171   :  { %v2591_v18 = vpack.c.bf16 %v531_v14, %v530_v11  ;;  %v516_v46 = vmax.f32 %v2550_v17, %v1859_v16  ;;  %v1862_v47 = vadd.f32 %v1861_v15, %v1860_v19  ;;  %v2212_v17 = vld [vmem:[%s2837_s2 + $0x188] sm:$0xff]   ;;  %v2254_v16 = vld [vmem:[%s2838_s3] sm:$0xff]   ;;  %v2256_v15 = vld [vmem:[%s2838_s3 + $0x10] sm:$0xff]  }
 0x172   :  { %1971 = vmatpush3.bf16.msra.mxu1 %v2209_v10  ;;  %v2255_v19 = vld [vmem:[%s2838_s3 + $0x8] sm:$0xff]  }
 0x173   :  { %v524_v13 = vmax.f32 %v508_v55, %v516_v46  ;;  %v517_v20 = vmax.f32 %v2552_v22, %v1862_v47  ;;  %2041 = vmatmul.mubr.bf16.vlgmr.msra.gmra.mrb[64].mxu0 %v2591_v18  ;;  %1972 = vmatprep.subr.bf16.mxu1 %v2262_v48  ;;  %v2214_v22 = vld [vmem:[%s2837_s2 + $0x190] sm:$0xff]   ;;  %v1091_v2 = vrot.slane %v2591_v18, 4  ;;  %v2257_v18 = vld [vmem:[%s2838_s3 + $0x18] sm:$0xff]  }
 0x174   :  { %2065 = vmatpush3.bf16.msra.mxu0 %v2210_v43  ;;  %2080 = vmatprep.mubr.msk.bf16.mxu0 %vm2263_vm0, %v2262_v48 }
 0x175   :  { %v525_v23 = vmax.f32 %v509_v57, %v517_v20  ;;  %2066 = vmatprep.subr.bf16.mxu0 %v2262_v48  ;;  %v532_v52 = vmax.f32 %v524_v13, 0.0  ;;  %v2217_v57 = vld [vmem:[%s2837_s2 + $0x38] sm:$0xff]   ;;  %v2258_v13 = vld [vmem:[%s2838_s3 + $0x20] sm:$0xff]   ;;  %v2259_v20 = vld [vmem:[%s2838_s3 + $0x28] sm:$0xff]  }
 0x176   :  { %1973 = vmatpush3.bf16.msra.mxu1 %v2211_v49 }
 0x177   :  { %v533_v55 = vmax.f32 %v525_v23, 0.0  ;;  %1974 = vmatprep.subr.bf16.mxu1 %v2262_v48  ;;  %v2260_v23 = vld [vmem:[%s2838_s3 + $0x30] sm:$0xff]  }
 0x178   :  { %2067 = vmatpush3.bf16.msra.mxu0 %v2212_v17 }
 0x179   :  { %v2619_v25 = vpack.c.bf16 %v533_v55, %v532_v52  ;;  %2068 = vmatprep.subr.bf16.mxu0 %v2262_v48 }
 0x17a   :  { %1975 = vmatpush3.bf16.msra.mxu1 %v2213_v21 }
 0x17b   :  { %1976 = vmatprep.subr.bf16.mxu1 %v2262_v48  ;;  %v1306_v7 = vrot.slane %v2619_v25, 4 }
 0x17c   :  { %2069 = vmatpush3.bf16.msra.mxu0 %v2214_v22 }
 0x17d   :  { %2070 = vmatprep.subr.bf16.mxu0 %v2262_v48 }
 0x17e   :  { %1977 = vmatpush3.bf16.msra.mxu1 %v2215_v24 }
 0x17f   :  { %1978 = vmatprep.subr.bf16.mxu1 %v2262_v48 }
 0x180   :  { %2071 = vmatpush3.bf16.msra.mxu0 %v2216_v56 }
 0x181   :  { %2072 = vmatprep.subr.bf16.mxu0 %v2262_v48 }
 0x182   :  { %1979 = vmatpush3.bf16.msra.mxu1 %v2217_v57 }
 0x183   :  { %1984 = vmatprep.subr.bf16.mxu1 %v2262_v48 }
 0x184   :  { %2073 = vmatpush3.bf16.msra.mxu0 %v2218_v26 }
 0x185   :  { %1981 = vmatmul.mubr.bf16.vlgmr.msra.gmra.mrb[4].mxu1 %v2554_v58  ;;  %2074 = vmatprep.subr.bf16.mxu0 %v2262_v48  ;;  %v2235_v58 = vld [vmem:[%s2837_s2 + $0xe8] sm:$0xff]  }
 0x186   :  { %1985 = vmatpush3.bf16.msra.mxu1 %v2219_v27  ;;  %2000 = vmatprep.mubr.msk.bf16.mxu1 %vm2263_vm0, %v2262_v48 }
 0x187   :  { %1986 = vmatprep.subr.bf16.mxu1 %v2262_v48 }
 0x188   :  { %2075 = vmatpush3.bf16.msra.mxu0 %v2220_v28 }
 0x189   :  { %2076 = vmatprep.subr.bf16.mxu0 %v2262_v48 }
 0x18a   :  { %1987 = vmatpush3.bf16.msra.mxu1 %v2221_v29 }
 0x18b   :  { %1988 = vmatprep.subr.bf16.mxu1 %v2262_v48 }
 0x18c   :  { %2077 = vmatpush3.bf16.msra.mxu0 %v2222_v31 }
 0x18d   :  { %2078 = vmatprep.subr.bf16.mxu0 %v2262_v48 }
 0x18e   :  { %1989 = vmatpush3.bf16.msra.mxu1 %v2223_v33 }
 0x18f   :  { %1990 = vmatprep.subr.bf16.mxu1 %v2262_v48 }
 0x190   :  { %2079 = vmatpush3.bf16.msra.mxu0 %v2224_v34 }
 0x191   :  { %2104 = vmatprep.subr.bf16.mxu0 %v2262_v48 }
 0x192   :  { %1991 = vmatpush3.bf16.msra.mxu1 %v2225_v36 }
 0x193   :  { %2081 = vmatmul.mubr.bf16.vlgmr.msra.gmra.mrb[68].mxu0 %v2619_v25  ;;  %1992 = vmatprep.subr.bf16.mxu1 %v2262_v48  ;;  %v2261_v25 = vld [vmem:[%s2838_s3 + $0x38] sm:$0xff]  }
 0x194   :  { %2120 = vmatprep.mubr.msk.bf16.mxu0 %vm2263_vm0, %v2262_v48  ;;  %2105 = vmatpush3.bf16.msra.mxu0 %v2254_v16 }
 0x195   :  { %2106 = vmatprep.subr.bf16.mxu0 %v2262_v48 }
 0x196   :  { %1993 = vmatpush3.bf16.msra.mxu1 %v2226_v37 }
 0x197   :  { %1994 = vmatprep.subr.bf16.mxu1 %v2262_v48 }
 0x198   :  { %2107 = vmatpush3.bf16.msra.mxu0 %v2255_v19 }
 0x199   :  { %2108 = vmatprep.subr.bf16.mxu0 %v2262_v48 }
 0x19a   :  { %1995 = vmatpush3.bf16.msra.mxu1 %v2227_v41 }
 0x19b   :  { %1996 = vmatprep.subr.bf16.mxu1 %v2262_v48 }
 0x19c   :  { %2109 = vmatpush3.bf16.msra.mxu0 %v2256_v15 }
 0x19d   :  { %2110 = vmatprep.subr.bf16.mxu0 %v2262_v48 }
 0x19e   :  { %1997 = vmatpush3.bf16.msra.mxu1 %v2228_v42 }
 0x19f   :  { %1998 = vmatprep.subr.bf16.mxu1 %v2262_v48 }
 0x1a0   :  { %2111 = vmatpush3.bf16.msra.mxu0 %v2257_v18 }
 0x1a1   :  { %2112 = vmatprep.subr.bf16.mxu0 %v2262_v48 }
 0x1a2   :  { %1999 = vmatpush3.bf16.msra.mxu1 %v2229_v44 }
 0x1a3   :  { %2004 = vmatprep.subr.bf16.mxu1 %v2262_v48 }
 0x1a4   :  { %2113 = vmatpush3.bf16.msra.mxu0 %v2258_v13 }
 0x1a5   :  { %2001 = vmatmul.mubr.bf16.vlgmr.msra.gmra.mrb[8].mxu1 %v2572_v12  ;;  %v2247_v12 = vld [vmem:[%s2837_s2 + $0x1c8] sm:$0xff]   ;;  %2114 = vmatprep.subr.bf16.mxu0 %v2262_v48 }
 0x1a6   :  { %2005 = vmatpush3.bf16.msra.mxu1 %v2230_v45  ;;  %2020 = vmatprep.mubr.msk.bf16.mxu1 %vm2263_vm0, %v2262_v48 }
 0x1a7   :  { %2006 = vmatprep.subr.bf16.mxu1 %v2262_v48 }
 0x1a8   :  { %2115 = vmatpush3.bf16.msra.mxu0 %v2259_v20 }
 0x1a9   :  { %2116 = vmatprep.subr.bf16.mxu0 %v2262_v48 }
 0x1aa   :  { %2007 = vmatpush3.bf16.msra.mxu1 %v2231_v50 }
 0x1ab   :  { %2008 = vmatprep.subr.bf16.mxu1 %v2262_v48 }
 0x1ac   :  { %2117 = vmatpush3.bf16.msra.mxu0 %v2260_v23 }
 0x1ad   :  { %2118 = vmatprep.subr.bf16.mxu0 %v2262_v48 }
 0x1ae   :  { %2009 = vmatpush3.bf16.msra.mxu1 %v2232_v51 }
 0x1af   :  { %2010 = vmatprep.subr.bf16.mxu1 %v2262_v48 }
 0x1b0   :  { %2119 = vmatpush3.bf16.msra.mxu0 %v2261_v25 }
 0x1b2   :  { %2011 = vmatpush3.bf16.msra.mxu1 %v2233_v53 }
 0x1b3   :  { %2012 = vmatprep.subr.bf16.mxu1 %v2262_v48 }
 0x1b6   :  { %2013 = vmatpush3.bf16.msra.mxu1 %v2234_v54 }
 0x1b7   :  { %2014 = vmatprep.subr.bf16.mxu1 %v2262_v48 }
 0x1ba   :  { %2015 = vmatpush3.bf16.msra.mxu1 %v2235_v58  ;;  %v1741_v58 = vld [vmem:[%s2839_s4] ss:$0 sm:$0xff] }
 0x1bb   :  { %2016 = vmatprep.subr.bf16.mxu1 %v2262_v48 }
 0x1be   :  { %2017 = vmatpush3.bf16.msra.mxu1 %v2236_v59 }
 0x1bf   :  { %2018 = vmatprep.subr.bf16.mxu1 %v2262_v48 }
 0x1c2   :  { %2019 = vmatpush3.bf16.msra.mxu1 %v2237_v30 }
 0x1c3   :  { %2044 = vmatprep.subr.bf16.mxu1 %v2262_v48 }
 0x1c5   :  { %2021 = vmatmul.mubr.bf16.vlgmr.msra.gmra.mrb[12].mxu1 %v876_v60 }
 0x1c6   :  { %2045 = vmatpush3.bf16.msra.mxu1 %v2238_v32  ;;  %2060 = vmatprep.mubr.msk.bf16.mxu1 %vm2263_vm0, %v2262_v48 }
 0x1c7   :  { %2046 = vmatprep.subr.bf16.mxu1 %v2262_v48 }
 0x1ca   :  { %2047 = vmatpush3.bf16.msra.mxu1 %v2239_v61 }
 0x1cb   :  { %2048 = vmatprep.subr.bf16.mxu1 %v2262_v48 }
 0x1ce   :  { %2049 = vmatpush3.bf16.msra.mxu1 %v2240_v62 }
 0x1cf   :  { %2050 = vmatprep.subr.bf16.mxu1 %v2262_v48 }
 0x1d2   :  { %2051 = vmatpush3.bf16.msra.mxu1 %v2241_v63 }
 0x1d3   :  { %2052 = vmatprep.subr.bf16.mxu1 %v2262_v48 }
 0x1d6   :  { %2053 = vmatpush3.bf16.msra.mxu1 %v2242_v0 }
 0x1d7   :  { %2054 = vmatprep.subr.bf16.mxu1 %v2262_v48 }
 0x1da   :  { %2055 = vmatpush3.bf16.msra.mxu1 %v2243_v9  ;;  %v1742_v9 = vld [vmem:[%s2839_s4 + $0x1] ss:$0 sm:$0xff] }
 0x1db   :  { %2056 = vmatprep.subr.bf16.mxu1 %v2262_v48 }
 0x1de   :  { %2057 = vmatpush3.bf16.msra.mxu1 %v2244_v35 }
 0x1df   :  { %2058 = vmatprep.subr.bf16.mxu1 %v2262_v48 }
 0x1e2   :  { %2059 = vmatpush3.bf16.msra.mxu1 %v2245_v38 }
 0x1e3   :  { %2084 = vmatprep.subr.bf16.mxu1 %v2262_v48 }
 0x1e5   :  { %2061 = vmatmul.mubr.bf16.vlgmr.msra.gmra.mrb[16].mxu1 %v1091_v2 }
 0x1e6   :  { %2085 = vmatpush3.bf16.msra.mxu1 %v2246_v1  ;;  %2100 = vmatprep.mubr.msk.bf16.mxu1 %vm2263_vm0, %v2262_v48 }
 0x1e7   :  { %2086 = vmatprep.subr.bf16.mxu1 %v2262_v48 }
 0x1ea   :  { %2087 = vmatpush3.bf16.msra.mxu1 %v2247_v12 }
 0x1eb   :  { %2088 = vmatprep.subr.bf16.mxu1 %v2262_v48 }
 0x1ee   :  { %2089 = vmatpush3.bf16.msra.mxu1 %v2248_v39 }
 0x1ef   :  { %2090 = vmatprep.subr.bf16.mxu1 %v2262_v48 }
 0x1f2   :  { %2091 = vmatpush3.bf16.msra.mxu1 %v2249_v40 }
 0x1f3   :  { %2092 = vmatprep.subr.bf16.mxu1 %v2262_v48 }
 0x1f6   :  { %2093 = vmatpush3.bf16.msra.mxu1 %v2250_v3 }
 0x1f7   :  { %2094 = vmatprep.subr.bf16.mxu1 %v2262_v48 }
 0x1fa   :  { %2095 = vmatpush3.bf16.msra.mxu1 %v2251_v4 }
 0x1fb   :  { %2096 = vmatprep.subr.bf16.mxu1 %v2262_v48 }
 0x1fe   :  { %2097 = vmatpush3.bf16.msra.mxu1 %v2252_v5 }
 0x1ff   :  { %2098 = vmatprep.subr.bf16.mxu1 %v2262_v48 }
 0x202   :  { %2099 = vmatpush3.bf16.msra.mxu1 %v2253_v6 }
 0x205   :  { %2101 = vmatmul.mubr.bf16.vlgmr.msra.gmra.mrb[20].mxu1 %v1306_v7 }
 0x238   :  { %v658_v8 = vpop.f32.mrb[0].mxu1 }
 0x239   :  { %v1962_v10 = vpop.f32.mrb[1].mxu1 }
 0x23a   :  { %v661_v11 = vpop.f32.mrb[2].mxu1 }
 0x23b   :  { %v1963_v14 = vpop.f32.mrb[3].mxu1 }
 0x246   :  { %v1066_v43 = vpop.f32.mrb[64].mxu0 }
 0x247   :  { %v2042_v46 = vpop.f32.mrb[65].mxu0 }
 0x248   :  { %v1069_v47 = vpop.f32.mrb[66].mxu0 }
 0x249   :  { %v2043_v49 = vpop.f32.mrb[67].mxu0 }
 0x258   :  { %v746_v17 = vpop.f32.mrb[4].mxu1 }
 0x259   :  { %v747_v21 = vadd.f32 %v746_v17, %v658_v8  ;;  %v1982_v52 = vpop.f32.mrb[5].mxu1 }
 0x25a   :  { %v749_v55 = vpop.f32.mrb[6].mxu1 }
 0x25b   :  { %v1983_v22 = vpop.f32.mrb[7].mxu1 }
 0x266   :  { %v1281_v24 = vpop.f32.mrb[68].mxu0 }
 0x267   :  { %v2082_v56 = vpop.f32.mrb[69].mxu0 }
 0x268   :  { %v1284_v57 = vpop.f32.mrb[70].mxu0 }
 0x269   :  { %v2083_v26 = vpop.f32.mrb[71].mxu0 }
 0x278   :  { %v851_v27 = vpop.f32.mrb[8].mxu1 }
 0x279   :  { %v857_v28 = vadd.f32 %v851_v27, %v747_v21  ;;  %v2002_v29 = vpop.f32.mrb[9].mxu1 }
 0x27a   :  { %v854_v31 = vpop.f32.mrb[10].mxu1 }
 0x27b   :  { %v2003_v33 = vpop.f32.mrb[11].mxu1 }
 0x298   :  { %v960_v34 = vpop.f32.mrb[12].mxu1 }
 0x299   :  { %v966_v36 = vadd.f32 %v960_v34, %v857_v28  ;;  %v2022_v37 = vpop.f32.mrb[13].mxu1 }
 0x29a   :  { %v963_v41 = vpop.f32.mrb[14].mxu1 }
 0x29b   :  { %v2023_v42 = vpop.f32.mrb[15].mxu1  ;;  %v1072_v48 = vadd.f32 %v1066_v43, %v966_v36 }
 0x2b8   :  { %v1175_v44 = vpop.f32.mrb[16].mxu1 }
 0x2b9   :  { %v1181_v45 = vadd.f32 %v1175_v44, %v1072_v48  ;;  %v2062_v50 = vpop.f32.mrb[17].mxu1 }
 0x2ba   :  { %v1178_v51 = vpop.f32.mrb[18].mxu1 }
 0x2bb   :  { %v2063_v53 = vpop.f32.mrb[19].mxu1  ;;  %v1287_v54 = vadd.f32 %v1281_v24, %v1181_v45 }
 0x2d8   :  { %v1390_v59 = vpop.f32.mrb[20].mxu1 }
 0x2d9   :  { %v1396_v30 = vadd.f32 %v1390_v59, %v1287_v54  ;;  %v2102_v32 = vpop.f32.mrb[21].mxu1 }
 0x2da   :  { %v1393_v60 = vpop.f32.mrb[22].mxu1 }
 0x2db   :  { %v1401_v61 = vadd.f32 %v1741_v58, %v1396_v30  ;;  %v2103_v62 = vpop.f32.mrb[23].mxu1 }
 0x2dd   :  { %v1402_v63 = vmax.f32 %v1401_v61, 0.0 }
 0x2df   :  { %v1403_v0 = vpack.c.bf16 %v1402_v63, %v1402_v63 }
 0x2e1   :  { %2121 = vmatmul.mubr.bf16.vlgmr.msra.gmra.mrb[72].mxu0 %v1403_v0 }
 0x3b4   :  { %v1506_v35 = vpop.f32.mrb[72].mxu0 }
 0x3b5   :  { %v1507_v38 = vadd.f32 %v1742_v9, %v1506_v35  ;;  %v2122_v1 = vpop.f32.mrb[73].mxu0 }
 0x3b6   :  { %v1509_v2 = vpop.f32.mrb[74].mxu0 }
 0x3b7   :  { %1512 = vst [vmem:[%s2840_s5] sm:$0xff] %v1507_v38  ;;  %v2123_v12 = vpop.f32.mrb[75].mxu0 }

</bundles_post_ra>
